<compile_context>
chip_gen: v7x
topology: tpu7x:2x2x1
jax: 0.10.0
libtpu: 0.0.40
codegen_flags: <defaults>
</compile_context>

<pallas_src>
import functools
import math

import jax
import jax.numpy as jnp
from jax.experimental import pallas as pl
from jax.experimental.pallas import tpu as pltpu


def _round_up(v, m):
    return ((v + m - 1) // m) * m


# ----------------------------- Pallas kernels ------------------------------ #
# Grid = (batch_tiles, time_chunks). Each grid step processes T_CHUNK timesteps for
# one batch tile; the recurrent state lives in f32 VMEM scratch and is carried
# across the (sequential / "arbitrary") time-chunk axis.

def _rnn_tanh_kernel(t_total, needs_mask,
                     x_ref, h0_ref, wih_ref, whh_ref, b_ref,
                     y_ref, hn_ref, h_scr):
    tc = pl.program_id(1)
    t_chunk, bt, dp = x_ref.shape
    gp = wih_ref.shape[1]

    @pl.when(tc == 0)
    def _():
        h_scr[...] = h0_ref[0].astype(jnp.float32)

    # Non-recurrent input projection for the whole chunk: one big MXU matmul.
    gi = jnp.dot(x_ref[...].reshape(t_chunk * bt, dp), wih_ref[...],
                 preferred_element_type=jnp.float32)
    gi = gi.reshape(t_chunk, bt, gp) + b_ref[...]        # bias added once per chunk

    whh = whh_ref[...]
    h = h_scr[...]
    t0 = tc * t_chunk
    for t in range(t_chunk):                             # static, fully unrolled
        h_new = jnp.tanh(gi[t] + jnp.dot(h.astype(whh.dtype), whh,
                                         preferred_element_type=jnp.float32))
        if needs_mask:
            h_new = jnp.where(t0 + t < t_total, h_new, h)
        h = h_new
        y_ref[t] = h.astype(y_ref.dtype)
    h_scr[...] = h

    @pl.when(tc == pl.num_programs(1) - 1)               # write h_n only once
    def _():
        hn_ref[0] = h.astype(hn_ref.dtype)


def _gru_kernel(t_total, needs_mask,
                x_ref, h0_ref, wih_ref, whh_ref, bih_ref, bhh_ref,
                y_ref, hn_ref, h_scr):
    tc = pl.program_id(1)
    t_chunk, bt, dp = x_ref.shape
    hp, gp = whh_ref.shape

    @pl.when(tc == 0)
    def _():
        h_scr[...] = h0_ref[0].astype(jnp.float32)

    gi = jnp.dot(x_ref[...].reshape(t_chunk * bt, dp), wih_ref[...],
                 preferred_element_type=jnp.float32)
    gi = gi.reshape(t_chunk, bt, gp) + bih_ref[...]
    bhh = jnp.broadcast_to(bhh_ref[...], (bt, gp))       # hoisted broadcast
    whh = whh_ref[...]

    h = h_scr[...]
    t0 = tc * t_chunk
    for t in range(t_chunk):
        gi_t = gi[t]
        gh = jnp.dot(h.astype(whh.dtype), whh,
                     preferred_element_type=jnp.float32) + bhh
        r = jax.nn.sigmoid(gi_t[:, 0:hp] + gh[:, 0:hp])
        z = jax.nn.sigmoid(gi_t[:, hp:2 * hp] + gh[:, hp:2 * hp])
        n = jnp.tanh(gi_t[:, 2 * hp:3 * hp] + r * gh[:, 2 * hp:3 * hp])
        h_new = (1.0 - z) * n + z * h
        if needs_mask:
            h_new = jnp.where(t0 + t < t_total, h_new, h)
        h = h_new
        y_ref[t] = h.astype(y_ref.dtype)
    h_scr[...] = h

    @pl.when(tc == pl.num_programs(1) - 1)
    def _():
        hn_ref[0] = h.astype(hn_ref.dtype)


def _lstm_kernel(t_total, needs_mask,
                 x_ref, h0_ref, c0_ref, wih_ref, whh_ref, b_ref,
                 y_ref, hn_ref, cn_ref, h_scr, c_scr):
    tc = pl.program_id(1)
    t_chunk, bt, dp = x_ref.shape
    hp, gp = whh_ref.shape

    @pl.when(tc == 0)
    def _():
        h_scr[...] = h0_ref[0].astype(jnp.float32)
        c_scr[...] = c0_ref[0].astype(jnp.float32)

    gi = jnp.dot(x_ref[...].reshape(t_chunk * bt, dp), wih_ref[...],
                 preferred_element_type=jnp.float32)
    gi = gi.reshape(t_chunk, bt, gp) + b_ref[...]        # combined (b_ih + b_hh)
    whh = whh_ref[...]

    h = h_scr[...]
    c = c_scr[...]
    t0 = tc * t_chunk
    for t in range(t_chunk):
        g = gi[t] + jnp.dot(h.astype(whh.dtype), whh,
                            preferred_element_type=jnp.float32)
        i = jax.nn.sigmoid(g[:, 0:hp])
        f = jax.nn.sigmoid(g[:, hp:2 * hp])
        gg = jnp.tanh(g[:, 2 * hp:3 * hp])
        o = jax.nn.sigmoid(g[:, 3 * hp:4 * hp])
        c_new = f * c + i * gg
        h_new = o * jnp.tanh(c_new)
        if needs_mask:
            keep = t0 + t < t_total
            h_new = jnp.where(keep, h_new, h)
            c_new = jnp.where(keep, c_new, c)
        h, c = h_new, c_new
        y_ref[t] = h.astype(y_ref.dtype)
    h_scr[...] = h
    c_scr[...] = c

    @pl.when(tc == pl.num_programs(1) - 1)
    def _():
        hn_ref[0] = h.astype(hn_ref.dtype)
        cn_ref[0] = c.astype(cn_ref.dtype)


# ------------------------------- wrapper ----------------------------------- #

def rnn_module_forward(rnn_class, x, h, params, *, t_chunk=16, b_tile=None):
    """Mirrors RnnModule.forward(x, h) -> (output, h_n) for num_layers=1, unidir."""
    T, B, D = x.shape
    H = params['hidden_size']
    dt = x.dtype
    n_gates = {'rnn': 1, 'gru': 3, 'lstm': 4}[rnn_class]

    # Lane/sublane-dense padded sizes.
    HP = _round_up(H, 128)
    DP = _round_up(D, 128)
    BP = _round_up(B, 16)
    GP = n_gates * HP

    T_CHUNK = min(t_chunk, T)
    NT = (T + T_CHUNK - 1) // T_CHUNK
    TP = NT * T_CHUNK
    needs_mask = (TP != T)

    if b_tile is None:
        # Split big batches across the two v7x TensorCores (parallel grid axis).
        b_tile = BP // 2 if BP >= 256 else BP
    assert BP % b_tile == 0
    NB = BP // b_tile

    # ---- pack parameters: gate-blocked, zero-padded, bf16 for the MXU ---- #
    def pack_w(w, in_dim, in_pad):
        w = jnp.asarray(w, jnp.float32).reshape(n_gates, H, in_dim)
        w = jnp.pad(w, ((0, 0), (0, HP - H), (0, in_pad - in_dim)))
        return jnp.transpose(w, (2, 0, 1)).reshape(in_pad, GP).astype(jnp.bfloat16)

    def pack_b(b):
        b = jnp.asarray(b, jnp.float32).reshape(n_gates, H)
        b = jnp.pad(b, ((0, 0), (0, HP - H)))
        return b.reshape(1, GP)

    def pack_state(s):
        return jnp.pad(jnp.asarray(s, jnp.float32),
                       ((0, 0), (0, BP - B), (0, HP - H)))

    wih = pack_w(params['weight_ih'], D, DP)   # (DP, GP) bf16
    whh = pack_w(params['weight_hh'], H, HP)   # (HP, GP) bf16

    # x padded & cast to bf16 (MXU input dtype); accumulation stays f32 in-kernel.
    x_p = jnp.pad(x.astype(jnp.bfloat16),
                  ((0, TP - T), (0, BP - B), (0, DP - D)))

    # ---- BlockSpecs ---- #
    x_spec = pl.BlockSpec((T_CHUNK, b_tile, DP), lambda b, t: (t, b, 0))
    y_spec = pl.BlockSpec((T_CHUNK, b_tile, HP), lambda b, t: (t, b, 0))
    st_spec = pl.BlockSpec((1, b_tile, HP), lambda b, t: (0, b, 0))
    wih_spec = pl.BlockSpec((DP, GP), lambda b, t: (0, 0))
    whh_spec = pl.BlockSpec((HP, GP), lambda b, t: (0, 0))
    bias_spec = pl.BlockSpec((1, GP), lambda b, t: (0, 0))

    # ---- explicit VMEM budget (weights resident + double-buffered blocks) ---- #
    def nbytes(shape, dtype):
        return math.prod(shape) * jnp.dtype(dtype).itemsize

    est = (nbytes((DP, GP), jnp.bfloat16) + nbytes((HP, GP), jnp.bfloat16)
           + 2 * nbytes((1, GP), jnp.float32)
           + 2 * (nbytes((T_CHUNK, b_tile, DP), jnp.bfloat16)
                  + nbytes((T_CHUNK, b_tile, HP), dt))
           + 8 * nbytes((b_tile, HP), jnp.float32)
           + nbytes((T_CHUNK, b_tile, GP), jnp.float32))     # in-kernel gi temp
    cp = pltpu.CompilerParams(
        dimension_semantics=("parallel", "arbitrary"),
        vmem_limit_bytes=int(min(max(2 * est, 16 * 2**20), 32 * 2**20)))

    if rnn_class == 'rnn':
        b = pack_b(jnp.asarray(params['bias_ih']) + jnp.asarray(params['bias_hh']))
        y_p, hn_p = pl.pallas_call(
            functools.partial(_rnn_tanh_kernel, T, needs_mask),
            out_shape=(jax.ShapeDtypeStruct((TP, BP, HP), dt),
                       jax.ShapeDtypeStruct((1, BP, HP), jnp.float32)),
            grid=(NB, NT),
            in_specs=[x_spec, st_spec, wih_spec, whh_spec, bias_spec],
            out_specs=(y_spec, st_spec),
            scratch_shapes=[pltpu.VMEM((b_tile, HP), jnp.float32)],
            compiler_params=cp,
        )(x_p, pack_state(h), wih, whh, b)
        return y_p[:T, :B, :H], hn_p[:, :B, :H].astype(h.dtype)

    if rnn_class == 'gru':
        bih = pack_b(params['bias_ih'])
        bhh = pack_b(params['bias_hh'])
        y_p, hn_p = pl.pallas_call(
            functools.partial(_gru_kernel, T, needs_mask),
            out_shape=(jax.ShapeDtypeStruct((TP, BP, HP), dt),
                       jax.ShapeDtypeStruct((1, BP, HP), jnp.float32)),
            grid=(NB, NT),
            in_specs=[x_spec, st_spec, wih_spec, whh_spec, bias_spec, bias_spec],
            out_specs=(y_spec, st_spec),
            scratch_shapes=[pltpu.VMEM((b_tile, HP), jnp.float32)],
            compiler_params=cp,
        )(x_p, pack_state(h), wih, whh, bih, bhh)
        return y_p[:T, :B, :H], hn_p[:, :B, :H].astype(h.dtype)

    if rnn_class == 'lstm':
        h0, c0 = h
        b = pack_b(jnp.asarray(params['bias_ih']) + jnp.asarray(params['bias_hh']))
        y_p, hn_p, cn_p = pl.pallas_call(
            functools.partial(_lstm_kernel, T, needs_mask),
            out_shape=(jax.ShapeDtypeStruct((TP, BP, HP), dt),
                       jax.ShapeDtypeStruct((1, BP, HP), jnp.float32),
                       jax.ShapeDtypeStruct((1, BP, HP), jnp.float32)),
            grid=(NB, NT),
            in_specs=[x_spec, st_spec, st_spec, wih_spec, whh_spec, bias_spec],
            out_specs=(y_spec, st_spec, st_spec),
            scratch_shapes=[pltpu.VMEM((b_tile, HP), jnp.float32),
                            pltpu.VMEM((b_tile, HP), jnp.float32)],
            compiler_params=cp,
        )(x_p, pack_state(h0), pack_state(c0), wih, whh, b)
        return (y_p[:T, :B, :H],
                (hn_p[:, :B, :H].astype(h0.dtype), cn_p[:, :B, :H].astype(c0.dtype)))

    raise ValueError(f"unknown rnn_class: {rnn_class}")


# ----------------------- deterministic param init -------------------------- #

def init_params(rnn_class, input_size, hidden_size, key):
    """Same shapes & init distribution as torch.nn.{RNN,GRU,LSTM} (num_layers=1)."""
    n_gates = {'rnn': 1, 'gru': 3, 'lstm': 4}[rnn_class]
    G = n_gates * hidden_size
    k = 1.0 / float(hidden_size) ** 0.5
    k0, k1, k2, k3 = jax.random.split(key, 4)
    u = lambda kk, shape: jax.random.uniform(kk, shape, jnp.float32, -k, k)
    return {
        'hidden_size': hidden_size,
        'weight_ih': u(k0, (G, input_size)),   # PyTorch layout: (gates*H, D)
        'weight_hh': u(k1, (G, hidden_size)),  # (gates*H, H)
        'bias_ih': u(k2, (G,)),
        'bias_hh': u(k3, (G,)),
    }


# --------------------------- pure-JAX reference ----------------------------- #

def reference_forward(rnn_class, x, h, params):
    H = params['hidden_size']
    wih, whh = params['weight_ih'], params['weight_hh']
    bih, bhh = params['bias_ih'], params['bias_hh']
    hp = jax.lax.Precision.HIGHEST
    dot = lambda a, b: jnp.dot(a, b, precision=hp)

    if rnn_class == 'rnn':
        def step(hh, xt):
            hn = jnp.tanh(dot(xt, wih.T) + bih + dot(hh, whh.T) + bhh)
            return hn, hn
        hn, ys = jax.lax.scan(step, h[0], x)
        return ys, hn[None]

    if rnn_class == 'gru':
        def step(hh, xt):
            gi = dot(xt, wih.T) + bih
            gh = dot(hh, whh.T) + bhh
            r = jax.nn.sigmoid(gi[:, :H] + gh[:, :H])
            z = jax.nn.sigmoid(gi[:, H:2 * H] + gh[:, H:2 * H])
            n = jnp.tanh(gi[:, 2 * H:] + r * gh[:, 2 * H:])
            hn = (1.0 - z) * n + z * hh
            return hn, hn
        hn, ys = jax.lax.scan(step, h[0], x)
        return ys, hn[None]

    # lstm
    h0, c0 = h

    def step(carry, xt):
        hh, cc = carry
        g = dot(xt, wih.T) + bih + dot(hh, whh.T) + bhh
        i = jax.nn.sigmoid(g[:, :H])
        f = jax.nn.sigmoid(g[:, H:2 * H])
        gg = jnp.tanh(g[:, 2 * H:3 * H])
        o = jax.nn.sigmoid(g[:, 3 * H:])
        cc = f * cc + i * gg
        hh = o * jnp.tanh(cc)
        return (hh, cc), hh

    (hn, cn), ys = jax.lax.scan(step, (h0[0], c0[0]), x)
    return ys, (hn[None], cn[None])


# ---------------------------------- main ------------------------------------ #

if __name__ == "__main__":
    key = jax.random.PRNGKey(0)
    kx, kh, kc, kp = jax.random.split(key, 4)

    # bf16 MXU inputs vs. an f32 reference -> loosened tolerance.
    tol = dict(atol=5e-2, rtol=5e-2)

    # (T=8: single chunk, no masking) and (T=20: two chunks, padded-tail masking).
    for (T, B, D, H) in ((8, 4, 16, 32), (20, 4, 16, 32)):
        x = jax.random.normal(kx, (T, B, D), jnp.float32)
        h0 = jax.random.normal(kh, (1, B, H), jnp.float32)
        c0 = jax.random.normal(kc, (1, B, H), jnp.float32)

        for kind in ('rnn', 'gru', 'lstm'):
            params = init_params(kind, D, H, kp)
            h_in = (h0, c0) if kind == 'lstm' else h0

            y, h_out = rnn_module_forward(kind, x, h_in, params)
            y = jax.block_until_ready(y)
            h_out = jax.block_until_ready(h_out)

            y_ref, h_ref = reference_forward(kind, x, h_in, params)
            assert y.shape == (T, B, H)
            assert jnp.allclose(y, y_ref, **tol), f"{kind}: output mismatch"
            if kind == 'lstm':
                assert jnp.allclose(h_out[0], h_ref[0], **tol), f"{kind}: h_n mismatch"
                assert jnp.allclose(h_out[1], h_ref[1], **tol), f"{kind}: c_n mismatch"
            else:
                assert h_out.shape == (1, B, H)
                assert jnp.allclose(h_out, h_ref, **tol), f"{kind}: h_n mismatch"

    print("KERNEL_OK")
</pallas_src>

<mosaic_0001>
module attributes {stable_mosaic.version = 11 : i64} {
  func.func @_rnn_tanh_kernel(%arg0: i32, %arg1: i32, %arg2: memref<8x16x128xbf16, #tpu.memory_space<vmem>>, %arg3: memref<1x16x128xf32, #tpu.memory_space<vmem>>, %arg4: memref<128x128xbf16, #tpu.memory_space<vmem>>, %arg5: memref<128x128xbf16, #tpu.memory_space<vmem>>, %arg6: memref<1x128xf32, #tpu.memory_space<vmem>>, %arg7: memref<8x16x128xf32, #tpu.memory_space<vmem>>, %arg8: memref<1x16x128xf32, #tpu.memory_space<vmem>>, %arg9: memref<16x128xf32, #tpu.memory_space<vmem>>) attributes {dimension_semantics = [#tpu.dimension_semantics<parallel>, #tpu.dimension_semantics<arbitrary>], iteration_bounds = array<i64: 1, 1>, scalar_prefetch = 0 : i64, scratch_operands = 1 : i64, tpu.core_type = #tpu.core_type<tc>, window_params = [{transform_indices = @transform_0, window_bounds = array<i64: 8, 16, 128>}, {transform_indices = @transform_1, window_bounds = array<i64: 1, 16, 128>}, {pipeline_mode = #tpu.pipeline_mode<synchronous>, transform_indices = @transform_2, window_bounds = array<i64: 128, 128>}, {pipeline_mode = #tpu.pipeline_mode<synchronous>, transform_indices = @transform_3, window_bounds = array<i64: 128, 128>}, {pipeline_mode = #tpu.pipeline_mode<synchronous>, transform_indices = @transform_4, window_bounds = array<i64: 1, 128>}, {transform_indices = @transform_5, window_bounds = array<i64: 8, 16, 128>}, {transform_indices = @transform_6, window_bounds = array<i64: 1, 16, 128>}]} {
    %c0_i32 = arith.constant 0 : i32
    %0 = arith.cmpi eq, %arg1, %c0_i32 : i32
    %1 = arith.extui %0 : i1 to i32
    %c0_i32_0 = arith.constant 0 : i32
    %2 = arith.cmpi ne, %1, %c0_i32_0 : i32
    scf.if %2 {
      %c0_40 = arith.constant 0 : index
      %c0_41 = arith.constant 0 : index
      %c0_42 = arith.constant 0 : index
      %90 = vector.load %arg3[%c0_40, %c0_41, %c0_42] : memref<1x16x128xf32, #tpu.memory_space<vmem>>, vector<1x16x128xf32>
      %91 = vector.shape_cast %90 : vector<1x16x128xf32> to vector<16x128xf32>
      %c0_43 = arith.constant 0 : index
      %c0_44 = arith.constant 0 : index
      %92 = vector.load %arg9[%c0_43, %c0_44] : memref<16x128xf32, #tpu.memory_space<vmem>>, vector<16x128xf32>
      tpu.vector_store %arg9[%c0_43, %c0_44], %91 {strides = array<i32>} : memref<16x128xf32, #tpu.memory_space<vmem>>, vector<16x128xf32>,
    } else {
    }
    %c0 = arith.constant 0 : index
    %c0_1 = arith.constant 0 : index
    %c0_2 = arith.constant 0 : index
    %3 = vector.load %arg2[%c0, %c0_1, %c0_2] : memref<8x16x128xbf16, #tpu.memory_space<vmem>>, vector<8x16x128xbf16>
    %4 = vector.shape_cast %3 : vector<8x16x128xbf16> to vector<128x128xbf16>
    %c0_3 = arith.constant 0 : index
    %c0_4 = arith.constant 0 : index
    %5 = vector.load %arg4[%c0_3, %c0_4] : memref<128x128xbf16, #tpu.memory_space<vmem>>, vector<128x128xbf16>
    %cst = arith.constant dense<0.000000e+00> : vector<128x128xf32>
    %6 = tpu.matmul %4, %5, %cst {dimension_numbers = #tpu.dot_dimension_numbers<[1], [0], [0], [1], [0, 0, 1, 1], [], []>} : vector<128x128xbf16>, vector<128x128xbf16>, vector<128x128xf32> -> vector<128x128xf32>
    %7 = vector.shape_cast %6 : vector<128x128xf32> to vector<8x16x128xf32>
    %c0_5 = arith.constant 0 : index
    %c0_6 = arith.constant 0 : index
    %8 = vector.load %arg6[%c0_5, %c0_6] : memref<1x128xf32, #tpu.memory_space<vmem>>, vector<1x128xf32>
    %9 = vector.shape_cast %8 : vector<1x128xf32> to vector<1x1x128xf32>
    %10 = vector.broadcast %9 : vector<1x1x128xf32> to vector<8x16x128xf32>
    %11 = arith.addf %7, %10 : vector<8x16x128xf32>
    %c0_7 = arith.constant 0 : index
    %c0_8 = arith.constant 0 : index
    %12 = vector.load %arg5[%c0_7, %c0_8] : memref<128x128xbf16, #tpu.memory_space<vmem>>, vector<128x128xbf16>
    %c0_9 = arith.constant 0 : index
    %c0_10 = arith.constant 0 : index
    %13 = vector.load %arg9[%c0_9, %c0_10] : memref<16x128xf32, #tpu.memory_space<vmem>>, vector<16x128xf32>
    %14 = vector.extract_strided_slice %11 {offsets = [0, 0, 0], sizes = [1, 16, 128], strides = [1, 1, 1]} : vector<8x16x128xf32> to vector<1x16x128xf32>
    %15 = vector.shape_cast %14 : vector<1x16x128xf32> to vector<16x128xf32>
    %16 = arith.truncf %13 : vector<16x128xf32> to vector<16x128xbf16>
    %cst_11 = arith.constant dense<0.000000e+00> : vector<16x128xf32>
    %17 = tpu.matmul %16, %12, %cst_11 {dimension_numbers = #tpu.dot_dimension_numbers<[1], [0], [0], [1], [0, 0, 1, 1], [], []>} : vector<16x128xbf16>, vector<128x128xbf16>, vector<16x128xf32> -> vector<16x128xf32>
    %18 = arith.addf %15, %17 : vector<16x128xf32>
    %19 = math.tanh %18 : vector<16x128xf32>
    %c0_12 = arith.constant 0 : index
    %c0_13 = arith.constant 0 : index
    %c0_14 = arith.constant 0 : index
    %20 = vector.load %arg7[%c0_12, %c0_13, %c0_14] : memref<8x16x128xf32, #tpu.memory_space<vmem>>, vector<1x16x128xf32>
    %21 = vector.shape_cast %20 : vector<1x16x128xf32> to vector<16x128xf32>
    %22 = vector.shape_cast %19 : vector<16x128xf32> to vector<1x16x128xf32>
    tpu.vector_store %arg7[%c0_12, %c0_13, %c0_14], %22 {strides = array<i32>} : memref<8x16x128xf32, #tpu.memory_space<vmem>>, vector<1x16x128xf32>,
    %23 = vector.extract_strided_slice %11 {offsets = [1, 0, 0], sizes = [1, 16, 128], strides = [1, 1, 1]} : vector<8x16x128xf32> to vector<1x16x128xf32>
    %24 = vector.shape_cast %23 : vector<1x16x128xf32> to vector<16x128xf32>
    %25 = arith.truncf %19 : vector<16x128xf32> to vector<16x128xbf16>
    %cst_15 = arith.constant dense<0.000000e+00> : vector<16x128xf32>
    %26 = tpu.matmul %25, %12, %cst_15 {dimension_numbers = #tpu.dot_dimension_numbers<[1], [0], [0], [1], [0, 0, 1, 1], [], []>} : vector<16x128xbf16>, vector<128x128xbf16>, vector<16x128xf32> -> vector<16x128xf32>
    %27 = arith.addf %24, %26 : vector<16x128xf32>
    %28 = math.tanh %27 : vector<16x128xf32>
    %c1 = arith.constant 1 : index
    %c0_16 = arith.constant 0 : index
    %c0_17 = arith.constant 0 : index
    %29 = vector.load %arg7[%c1, %c0_16, %c0_17] : memref<8x16x128xf32, #tpu.memory_space<vmem>>, vector<1x16x128xf32>
    %30 = vector.shape_cast %29 : vector<1x16x128xf32> to vector<16x128xf32>
    %31 = vector.shape_cast %28 : vector<16x128xf32> to vector<1x16x128xf32>
    tpu.vector_store %arg7[%c1, %c0_16, %c0_17], %31 {strides = array<i32>} : memref<8x16x128xf32, #tpu.memory_space<vmem>>, vector<1x16x128xf32>,
    %32 = vector.extract_strided_slice %11 {offsets = [2, 0, 0], sizes = [1, 16, 128], strides = [1, 1, 1]} : vector<8x16x128xf32> to vector<1x16x128xf32>
    %33 = vector.shape_cast %32 : vector<1x16x128xf32> to vector<16x128xf32>
    %34 = arith.truncf %28 : vector<16x128xf32> to vector<16x128xbf16>
    %cst_18 = arith.constant dense<0.000000e+00> : vector<16x128xf32>
    %35 = tpu.matmul %34, %12, %cst_18 {dimension_numbers = #tpu.dot_dimension_numbers<[1], [0], [0], [1], [0, 0, 1, 1], [], []>} : vector<16x128xbf16>, vector<128x128xbf16>, vector<16x128xf32> -> vector<16x128xf32>
    %36 = arith.addf %33, %35 : vector<16x128xf32>
    %37 = math.tanh %36 : vector<16x128xf32>
    %c2 = arith.constant 2 : index
    %c0_19 = arith.constant 0 : index
    %c0_20 = arith.constant 0 : index
    %38 = vector.load %arg7[%c2, %c0_19, %c0_20] : memref<8x16x128xf32, #tpu.memory_space<vmem>>, vector<1x16x128xf32>
    %39 = vector.shape_cast %38 : vector<1x16x128xf32> to vector<16x128xf32>
    %40 = vector.shape_cast %37 : vector<16x128xf32> to vector<1x16x128xf32>
    tpu.vector_store %arg7[%c2, %c0_19, %c0_20], %40 {strides = array<i32>} : memref<8x16x128xf32, #tpu.memory_space<vmem>>, vector<1x16x128xf32>,
    %41 = vector.extract_strided_slice %11 {offsets = [3, 0, 0], sizes = [1, 16, 128], strides = [1, 1, 1]} : vector<8x16x128xf32> to vector<1x16x128xf32>
    %42 = vector.shape_cast %41 : vector<1x16x128xf32> to vector<16x128xf32>
    %43 = arith.truncf %37 : vector<16x128xf32> to vector<16x128xbf16>
    %cst_21 = arith.constant dense<0.000000e+00> : vector<16x128xf32>
    %44 = tpu.matmul %43, %12, %cst_21 {dimension_numbers = #tpu.dot_dimension_numbers<[1], [0], [0], [1], [0, 0, 1, 1], [], []>} : vector<16x128xbf16>, vector<128x128xbf16>, vector<16x128xf32> -> vector<16x128xf32>
    %45 = arith.addf %42, %44 : vector<16x128xf32>
    %46 = math.tanh %45 : vector<16x128xf32>
    %c3 = arith.constant 3 : index
    %c0_22 = arith.constant 0 : index
    %c0_23 = arith.constant 0 : index
    %47 = vector.load %arg7[%c3, %c0_22, %c0_23] : memref<8x16x128xf32, #tpu.memory_space<vmem>>, vector<1x16x128xf32>
    %48 = vector.shape_cast %47 : vector<1x16x128xf32> to vector<16x128xf32>
    %49 = vector.shape_cast %46 : vector<16x128xf32> to vector<1x16x128xf32>
    tpu.vector_store %arg7[%c3, %c0_22, %c0_23], %49 {strides = array<i32>} : memref<8x16x128xf32, #tpu.memory_space<vmem>>, vector<1x16x128xf32>,
    %50 = vector.extract_strided_slice %11 {offsets = [4, 0, 0], sizes = [1, 16, 128], strides = [1, 1, 1]} : vector<8x16x128xf32> to vector<1x16x128xf32>
    %51 = vector.shape_cast %50 : vector<1x16x128xf32> to vector<16x128xf32>
    %52 = arith.truncf %46 : vector<16x128xf32> to vector<16x128xbf16>
    %cst_24 = arith.constant dense<0.000000e+00> : vector<16x128xf32>
    %53 = tpu.matmul %52, %12, %cst_24 {dimension_numbers = #tpu.dot_dimension_numbers<[1], [0], [0], [1], [0, 0, 1, 1], [], []>} : vector<16x128xbf16>, vector<128x128xbf16>, vector<16x128xf32> -> vector<16x128xf32>
    %54 = arith.addf %51, %53 : vector<16x128xf32>
    %55 = math.tanh %54 : vector<16x128xf32>
    %c4 = arith.constant 4 : index
    %c0_25 = arith.constant 0 : index
    %c0_26 = arith.constant 0 : index
    %56 = vector.load %arg7[%c4, %c0_25, %c0_26] : memref<8x16x128xf32, #tpu.memory_space<vmem>>, vector<1x16x128xf32>
    %57 = vector.shape_cast %56 : vector<1x16x128xf32> to vector<16x128xf32>
    %58 = vector.shape_cast %55 : vector<16x128xf32> to vector<1x16x128xf32>
    tpu.vector_store %arg7[%c4, %c0_25, %c0_26], %58 {strides = array<i32>} : memref<8x16x128xf32, #tpu.memory_space<vmem>>, vector<1x16x128xf32>,
    %59 = vector.extract_strided_slice %11 {offsets = [5, 0, 0], sizes = [1, 16, 128], strides = [1, 1, 1]} : vector<8x16x128xf32> to vector<1x16x128xf32>
    %60 = vector.shape_cast %59 : vector<1x16x128xf32> to vector<16x128xf32>
    %61 = arith.truncf %55 : vector<16x128xf32> to vector<16x128xbf16>
    %cst_27 = arith.constant dense<0.000000e+00> : vector<16x128xf32>
    %62 = tpu.matmul %61, %12, %cst_27 {dimension_numbers = #tpu.dot_dimension_numbers<[1], [0], [0], [1], [0, 0, 1, 1], [], []>} : vector<16x128xbf16>, vector<128x128xbf16>, vector<16x128xf32> -> vector<16x128xf32>
    %63 = arith.addf %60, %62 : vector<16x128xf32>
    %64 = math.tanh %63 : vector<16x128xf32>
    %c5 = arith.constant 5 : index
    %c0_28 = arith.constant 0 : index
    %c0_29 = arith.constant 0 : index
    %65 = vector.load %arg7[%c5, %c0_28, %c0_29] : memref<8x16x128xf32, #tpu.memory_space<vmem>>, vector<1x16x128xf32>
    %66 = vector.shape_cast %65 : vector<1x16x128xf32> to vector<16x128xf32>
    %67 = vector.shape_cast %64 : vector<16x128xf32> to vector<1x16x128xf32>
    tpu.vector_store %arg7[%c5, %c0_28, %c0_29], %67 {strides = array<i32>} : memref<8x16x128xf32, #tpu.memory_space<vmem>>, vector<1x16x128xf32>,
    %68 = vector.extract_strided_slice %11 {offsets = [6, 0, 0], sizes = [1, 16, 128], strides = [1, 1, 1]} : vector<8x16x128xf32> to vector<1x16x128xf32>
    %69 = vector.shape_cast %68 : vector<1x16x128xf32> to vector<16x128xf32>
    %70 = arith.truncf %64 : vector<16x128xf32> to vector<16x128xbf16>
    %cst_30 = arith.constant dense<0.000000e+00> : vector<16x128xf32>
    %71 = tpu.matmul %70, %12, %cst_30 {dimension_numbers = #tpu.dot_dimension_numbers<[1], [0], [0], [1], [0, 0, 1, 1], [], []>} : vector<16x128xbf16>, vector<128x128xbf16>, vector<16x128xf32> -> vector<16x128xf32>
    %72 = arith.addf %69, %71 : vector<16x128xf32>
    %73 = math.tanh %72 : vector<16x128xf32>
    %c6 = arith.constant 6 : index
    %c0_31 = arith.constant 0 : index
    %c0_32 = arith.constant 0 : index
    %74 = vector.load %arg7[%c6, %c0_31, %c0_32] : memref<8x16x128xf32, #tpu.memory_space<vmem>>, vector<1x16x128xf32>
    %75 = vector.shape_cast %74 : vector<1x16x128xf32> to vector<16x128xf32>
    %76 = vector.shape_cast %73 : vector<16x128xf32> to vector<1x16x128xf32>
    tpu.vector_store %arg7[%c6, %c0_31, %c0_32], %76 {strides = array<i32>} : memref<8x16x128xf32, #tpu.memory_space<vmem>>, vector<1x16x128xf32>,
    %77 = vector.extract_strided_slice %11 {offsets = [7, 0, 0], sizes = [1, 16, 128], strides = [1, 1, 1]} : vector<8x16x128xf32> to vector<1x16x128xf32>
    %78 = vector.shape_cast %77 : vector<1x16x128xf32> to vector<16x128xf32>
    %79 = arith.truncf %73 : vector<16x128xf32> to vector<16x128xbf16>
    %cst_33 = arith.constant dense<0.000000e+00> : vector<16x128xf32>
    %80 = tpu.matmul %79, %12, %cst_33 {dimension_numbers = #tpu.dot_dimension_numbers<[1], [0], [0], [1], [0, 0, 1, 1], [], []>} : vector<16x128xbf16>, vector<128x128xbf16>, vector<16x128xf32> -> vector<16x128xf32>
    %81 = arith.addf %78, %80 : vector<16x128xf32>
    %82 = math.tanh %81 : vector<16x128xf32>
    %c7 = arith.constant 7 : index
    %c0_34 = arith.constant 0 : index
    %c0_35 = arith.constant 0 : index
    %83 = vector.load %arg7[%c7, %c0_34, %c0_35] : memref<8x16x128xf32, #tpu.memory_space<vmem>>, vector<1x16x128xf32>
    %84 = vector.shape_cast %83 : vector<1x16x128xf32> to vector<16x128xf32>
    %85 = vector.shape_cast %82 : vector<16x128xf32> to vector<1x16x128xf32>
    tpu.vector_store %arg7[%c7, %c0_34, %c0_35], %85 {strides = array<i32>} : memref<8x16x128xf32, #tpu.memory_space<vmem>>, vector<1x16x128xf32>,
    %c0_36 = arith.constant 0 : index
    %c0_37 = arith.constant 0 : index
    %86 = vector.load %arg9[%c0_36, %c0_37] : memref<16x128xf32, #tpu.memory_space<vmem>>, vector<16x128xf32>
    tpu.vector_store %arg9[%c0_36, %c0_37], %82 {strides = array<i32>} : memref<16x128xf32, #tpu.memory_space<vmem>>, vector<16x128xf32>,
    %c0_i32_38 = arith.constant 0 : i32
    %87 = arith.cmpi eq, %arg1, %c0_i32_38 : i32
    %88 = arith.extui %87 : i1 to i32
    %c0_i32_39 = arith.constant 0 : i32
    %89 = arith.cmpi ne, %88, %c0_i32_39 : i32
    scf.if %89 {
      %c0_40 = arith.constant 0 : index
      %c0_41 = arith.constant 0 : index
      %c0_42 = arith.constant 0 : index
      %90 = vector.load %arg8[%c0_40, %c0_41, %c0_42] : memref<1x16x128xf32, #tpu.memory_space<vmem>>, vector<1x16x128xf32>
      %91 = vector.shape_cast %90 : vector<1x16x128xf32> to vector<16x128xf32>
      %92 = vector.shape_cast %82 : vector<16x128xf32> to vector<1x16x128xf32>
      tpu.vector_store %arg8[%c0_40, %c0_41, %c0_42], %92 {strides = array<i32>} : memref<1x16x128xf32, #tpu.memory_space<vmem>>, vector<1x16x128xf32>,
    } else {
    }
    return
  }
  func.func @transform_0(%arg0: i32, %arg1: i32) -> (i32, i32, i32) {
    %c0_i32 = arith.constant 0 : i32
    %c0_i32_0 = arith.constant 0 : i32
    return %arg1, %arg0, %c0_i32 : i32, i32, i32
  }
  func.func @transform_1(%arg0: i32, %arg1: i32) -> (i32, i32, i32) {
    %c0_i32 = arith.constant 0 : i32
    %c0_i32_0 = arith.constant 0 : i32
    %c0_i32_1 = arith.constant 0 : i32
    return %c0_i32, %arg0, %c0_i32_0 : i32, i32, i32
  }
  func.func @transform_2(%arg0: i32, %arg1: i32) -> (i32, i32) {
    %c0_i32 = arith.constant 0 : i32
    %c0_i32_0 = arith.constant 0 : i32
    %c0_i32_1 = arith.constant 0 : i32
    return %c0_i32, %c0_i32_0 : i32, i32
  }
  func.func @transform_3(%arg0: i32, %arg1: i32) -> (i32, i32) {
    %c0_i32 = arith.constant 0 : i32
    %c0_i32_0 = arith.constant 0 : i32
    %c0_i32_1 = arith.constant 0 : i32
    return %c0_i32, %c0_i32_0 : i32, i32
  }
  func.func @transform_4(%arg0: i32, %arg1: i32) -> (i32, i32) {
    %c0_i32 = arith.constant 0 : i32
    %c0_i32_0 = arith.constant 0 : i32
    %c0_i32_1 = arith.constant 0 : i32
    return %c0_i32, %c0_i32_0 : i32, i32
  }
  func.func @transform_5(%arg0: i32, %arg1: i32) -> (i32, i32, i32) {
    %c0_i32 = arith.constant 0 : i32
    %c0_i32_0 = arith.constant 0 : i32
    return %arg1, %arg0, %c0_i32 : i32, i32, i32
  }
  func.func @transform_6(%arg0: i32, %arg1: i32) -> (i32, i32, i32) {
    %c0_i32 = arith.constant 0 : i32
    %c0_i32_0 = arith.constant 0 : i32
    %c0_i32_1 = arith.constant 0 : i32
    return %c0_i32, %arg0, %c0_i32_0 : i32, i32, i32
  }
}

</mosaic_0001>

<bundles_post_ra>
// kernel: tpu_custom_call.1
= control target key start
LH: loop header
LB: loop body
LE: loop exit
PB: predicated region body
PF: predicated region fallthrough
CT: control target
= control target key end

     0   :  { %12 = vsyncpa [#allocation4], 0  ;;  %s1718_s0 = inlined_call_operand.hbm [shape: bf16[8,16,128], index: 0, kind: input, shape index: {}]   ;;  %s1719_s1 = inlined_call_operand.hbm [shape: f32[1,16,128], index: 1, kind: input, shape index: {}]   ;;  %s1720_s2 = inlined_call_operand.hbm [shape: bf16[128,128], index: 2, kind: input, shape index: {}]   ;;  %s1721_s3 = inlined_call_operand.hbm [shape: bf16[128,128], index: 3, kind: input, shape index: {}]   ;;  %s1722_s4 = inlined_call_operand.vmem [shape: f32[1,128], index: 4, kind: input, shape index: {}]   ;;  %s1723_s5 = inlined_call_operand.hbm [shape: f32[8,16,128], index: 5, kind: output, shape index: {0}]   ;;  %s1724_s6 = inlined_call_operand.hbm [shape: f32[1,16,128], index: 6, kind: output, shape index: {1}]  }
   0x1   :  { %13 = vsyncpa [#allocation7], 0 }
   0x2   :  { %14 = vsyncpa [#allocation10], 0 }
   0x3   :  { %15 = vsyncpa [#allocation5], 0 }
   0x4   :  { %16 = vsyncpa [#allocation13], 0  ;;  %s1350_s21 = smov [#allocation6]   ;;  %s1208_s25 = scalar_lea.hbm %s1719_s1, 256 }
   0x5   :  { %s34_s22 = sshll.u32 %s1350_s21, 4  ;;  %p1209_p0 = scmp.ne.s32.totalorder %s1719_s1, %s1208_s25  ;;  %s35_s22 = int_to_ptr.vmem [resolvable:$true] %s34_s22 }
   0x6   :  { %p1212_p1 = scmp.lt.u32.totalorder %s1208_s25, %s1719_s1 }
   0x8   :  { %p1214_p2 = pnand %p1212_p1, %p1209_p0 }
   0xa   :  { %1217 = shalt.err (!%p1214_p2)
}
   0xb   :  { %s1218_s30 = scalar_lea.vmem %s35_s22, 256  ;;  %p1223_p4 = scmp.lt.s32.totalorder %s35_s22, %s35_s22 }
   0xc   :  { %p1219_p3 = scmp.ne.s32.totalorder %s35_s22, %s1218_s30  ;;  %p1224_p5 = scmp.lt.s32.totalorder %s1218_s30, %s1218_s30 }
   0xe   :  { %p1225_p6 = por %p1224_p5, %p1223_p4 }
  0x10   :  { %p1226_p7 = pnand %p1225_p6, %p1219_p3 }
  0x12   :  { %1229 = shalt.err (!%p1226_p7)
}
  0x13   :  { %s1351_s7 = smov 128   ;;  %s1352_s8 = smov 8  }
  0x14   :  { %40 = dma.hbm_to_vmem [thread:$0]  %s1719_s1, 256, %s35_s22, [#allocation7], %s1351_s7, %s1351_s7, %s1352_s8  }
  0x15   :  { %s1353_s11 = smov [#allocation3]   ;;  %s1230_s15 = scalar_lea.hbm %s1718_s0, 1024 }
  0x16   :  { %s22_s12 = sshll.u32 %s1353_s11, 4  ;;  %p1231_p8 = scmp.ne.s32.totalorder %s1718_s0, %s1230_s15  ;;  %s23_s12 = int_to_ptr.vmem [resolvable:$true] %s22_s12 }
  0x17   :  { %p1234_p9 = scmp.lt.u32.totalorder %s1230_s15, %s1718_s0 }
  0x19   :  { %p1236_p10 = pnand %p1234_p9, %p1231_p8 }
  0x1b   :  { %1239 = shalt.err (!%p1236_p10)
}
  0x1c   :  { %s1240_s20 = scalar_lea.vmem %s23_s12, 1024  ;;  %p1245_p12 = scmp.lt.s32.totalorder %s23_s12, %s23_s12 }
  0x1d   :  { %p1241_p11 = scmp.ne.s32.totalorder %s23_s12, %s1240_s20  ;;  %p1246_p13 = scmp.lt.s32.totalorder %s1240_s20, %s1240_s20 }
  0x1f   :  { %p1247_p0 = por %p1246_p13, %p1245_p12 }
  0x21   :  { %p1248_p1 = pnand %p1247_p0, %p1241_p11 }
  0x23   :  { %1251 = shalt.err (!%p1248_p1)
}
  0x24   :  { %s1354_s1 = smov 64   ;;  %s1355_s21 = smov 4  }
  0x25   :  { %28 = dma.hbm_to_vmem [thread:$0]  %s1718_s0, 1024, %s23_s12, [#allocation4], %s1354_s1, %s1354_s1, %s1355_s21  }
  0x26   :  { %s1356_s24 = smov [#allocation8]   ;;  %s1357_s26 = smov [#allocation9]  }
  0x27   :  { %s46_s25 = sshll.u32 %s1356_s24, 4  ;;  %s58_s27 = sshll.u32 %s1357_s26, 4  ;;  %s47_s25 = int_to_ptr.vmem [resolvable:$true] %s46_s25  ;;  %s1427_s27 = int_to_ptr.vmem [resolvable:$true] %s58_s27 }
  0x28   :  { %s1252_s30 = scalar_lea.hbm %s1720_s2, 1024 }
  0x29   :  { %p1253_p2 = scmp.ne.s32.totalorder %s1720_s2, %s1252_s30  ;;  %p1256_p3 = scmp.lt.u32.totalorder %s1252_s30, %s1720_s2 }
  0x2b   :  { %p1258_p4 = pnand %p1256_p3, %p1253_p2 }
  0x2d   :  { %1261 = shalt.err (!%p1258_p4)
}
  0x2e   :  { %s1262_s0 = scalar_lea.vmem %s47_s25, 1024  ;;  %p1267_p6 = scmp.lt.s32.totalorder %s47_s25, %s47_s25 }
  0x2f   :  { %p1263_p5 = scmp.ne.s32.totalorder %s47_s25, %s1262_s0  ;;  %p1268_p7 = scmp.lt.s32.totalorder %s1262_s0, %s1262_s0 }
  0x31   :  { %p1269_p8 = por %p1268_p7, %p1267_p6 }
  0x33   :  { %p1270_p9 = pnand %p1269_p8, %p1263_p5 }
  0x35   :  { %1273 = shalt.err (!%p1270_p9)
}
  0x36   :  { %52 = dma.hbm_to_vmem [thread:$0]  %s1720_s2, 1024, %s47_s25, [#allocation7], %s1354_s1, %s1354_s1, %s1355_s21  }
  0x37   :  { %s1274_s17 = scalar_lea.hbm %s1721_s3, 1024 }
  0x38   :  { %p1275_p10 = scmp.ne.s32.totalorder %s1721_s3, %s1274_s17  ;;  %p1278_p11 = scmp.lt.u32.totalorder %s1274_s17, %s1721_s3 }
  0x3a   :  { %p1280_p12 = pnand %p1278_p11, %p1275_p10 }
  0x3c   :  { %1283 = shalt.err (!%p1280_p12)
}
  0x3d   :  { %s1284_s23 = scalar_lea.vmem %s1427_s27, 1024  ;;  %p1289_p0 = scmp.lt.s32.totalorder %s1427_s27, %s1427_s27 }
  0x3e   :  { %p1285_p13 = scmp.ne.s32.totalorder %s1427_s27, %s1284_s23  ;;  %p1290_p1 = scmp.lt.s32.totalorder %s1284_s23, %s1284_s23 }
  0x40   :  { %p1291_p2 = por %p1290_p1, %p1289_p0 }
  0x42   :  { %p1292_p3 = pnand %p1291_p2, %p1285_p13 }
  0x44   :  { %1295 = shalt.err (!%p1292_p3)
}
  0x45   :  { %64 = dma.hbm_to_vmem [thread:$0]  %s1721_s3, 1024, %s1427_s27, [#allocation10], %s1354_s1, %s1354_s1, %s1355_s21  }
  0x46   :  { %1340 = dma.done.wait [#allocation4], 1024  }
  0x47   :  { %1341 = vsyncadd [#allocation4], 4294966272 }
  0x48   :  { %1342 = dma.done.wait [#allocation7], 1280  }
  0x49   :  { %1343 = vsyncadd [#allocation7], 4294966016 }
  0x4a   :  { %1344 = dma.done.wait [#allocation10], 1024  }
  0x4b   :  { %1345 = vsyncadd [#allocation10], 4294966272  ;;  %v1358_v0 = vmov 0.0   ;;  %vm1359_vm0 = vmmov 0   ;;  %v1152_v1 = vld [vmem:[#allocation8] sm:$0xff]   ;;  %v1154_v3 = vld [vmem:[#allocation8 + $0x8] sm:$0xff]  }
  0x4c   :  { %980 = vmatprep.subr.bf16.mxu1 %v1358_v0  ;;  %996 = vmatprep.mubr.msk.bf16.mxu1 %vm1359_vm0, %v1358_v0  ;;  %v1467_v2 = vld [vmem:[#allocation9] sm:$0xff]   ;;  %v1470_v4 = vld [vmem:[#allocation9 + $0x8] sm:$0xff]   ;;  %v1156_v5 = vld [vmem:[#allocation8 + $0x10] sm:$0xff]   ;;  %s1361_s25 = smov [#allocation12]  }
  0x4d   :  { %948 = vmatprep.subr.bf16.mxu0 %v1152_v1  ;;  %981 = vmatpush3.bf16.msra.mxu1 %v1467_v2  ;;  %v1474_v6 = vld [vmem:[#allocation9 + $0x10] sm:$0xff]   ;;  %v1158_v7 = vld [vmem:[#allocation8 + $0x18] sm:$0xff]   ;;  %v1160_v9 = vld [vmem:[#allocation8 + $0x20] sm:$0xff]   ;;  %s817_s26 = sshll.u32 %s1361_s25, 4  ;;  %s1681_s26 = int_to_ptr.vmem [resolvable:$true] %s817_s26 }
  0x4e   :  { %949 = vmatpush3.bf16.msra.mxu0 %v1152_v1  ;;  %982 = vmatprep.subr.bf16.mxu1 %v1358_v0  ;;  %v1478_v8 = vld [vmem:[#allocation9 + $0x18] sm:$0xff]   ;;  %v1481_v10 = vld [vmem:[#allocation9 + $0x20] sm:$0xff]   ;;  %v1162_v11 = vld [vmem:[#allocation8 + $0x28] sm:$0xff]  }
  0x4f   :  { %950 = vmatprep.subr.bf16.mxu0 %v1154_v3  ;;  %v1168_v12 = vld [vmem:[#allocation3] sm:$0xff]   ;;  %v1486_v13 = vld [vmem:[#allocation9 + $0x28] sm:$0xff]   ;;  %v1166_v16 = vld [vmem:[#allocation8 + $0x38] sm:$0xff]  }
  0x50   :  { %964 = vmatprep.mubr.bf16.mxu0 %v1168_v12  ;;  %v1164_v14 = vld [vmem:[#allocation8 + $0x30] sm:$0xff]   ;;  %v1494_v17 = vld [vmem:[#allocation9 + $0x38] sm:$0xff]   ;;  %v1170_v22 = vld [vmem:[#allocation3 + $0x10] sm:$0xff]  }
  0x51   :  { %983 = vmatpush3.bf16.msra.mxu1 %v1470_v4  ;;  %v1490_v15 = vld [vmem:[#allocation9 + $0x30] sm:$0xff]   ;;  %v85_v19 = vld [vmem:[#allocation6 + $0x8] sm:$0xff]  ;;  %v1171_v23 = vld [vmem:[#allocation3 + $0x18] sm:$0xff]  }
  0x52   :  { %951 = vmatpush3.bf16.msra.mxu0 %v1154_v3  ;;  %984 = vmatprep.subr.bf16.mxu1 %v1358_v0  ;;  %v84_v18 = vld [vmem:[#allocation6] sm:$0xff]  ;;  %v1169_v20 = vld [vmem:[#allocation3 + $0x8] sm:$0xff]   ;;  %v1174_v26 = vld [vmem:[#allocation3 + $0x30] sm:$0xff]  }
  0x53   :  { %952 = vmatprep.subr.bf16.mxu0 %v1156_v5  ;;  %v354_v21 = vpack.c.bf16 %v85_v19, %v84_v18  ;;  %v1172_v24 = vld [vmem:[#allocation3 + $0x20] sm:$0xff]   ;;  %v1173_v25 = vld [vmem:[#allocation3 + $0x28] sm:$0xff]   ;;  %v1175_v27 = vld [vmem:[#allocation3 + $0x38] sm:$0xff]  }
  0x54   :  { %v1539_v28 = vld [vmem:[%s1722_s4] ss:$0 sm:$0xff]  ;;  %s1360_s4 = smov [#allocation11]  }
  0x55   :  { %985 = vmatpush3.bf16.msra.mxu1 %v1474_v6  ;;  %s805_s21 = sshll.u32 %s1360_s4, 4  ;;  %s806_s21 = int_to_ptr.vmem [resolvable:$true] %s805_s21 }
  0x56   :  { %953 = vmatpush3.bf16.msra.mxu0 %v1156_v5  ;;  %986 = vmatprep.subr.bf16.mxu1 %v1358_v0  ;;  %s1296_s27 = scalar_lea.vmem %s806_s21, 2048  ;;  %p1301_p5 = scmp.lt.s32.totalorder %s806_s21, %s806_s21 }
  0x57   :  { %954 = vmatprep.subr.bf16.mxu0 %v1158_v7  ;;  %p1297_p4 = scmp.ne.s32.totalorder %s806_s21, %s1296_s27  ;;  %p1302_p6 = scmp.lt.s32.totalorder %s1296_s27, %s1296_s27 }
  0x59   :  { %987 = vmatpush3.bf16.msra.mxu1 %v1478_v8  ;;  %p1303_p7 = por %p1302_p6, %p1301_p5 }
  0x5a   :  { %955 = vmatpush3.bf16.msra.mxu0 %v1158_v7  ;;  %988 = vmatprep.subr.bf16.mxu1 %v1358_v0 }
  0x5b   :  { %956 = vmatprep.subr.bf16.mxu0 %v1160_v9  ;;  %p1304_p8 = pnand %p1303_p7, %p1297_p4 }
  0x5d   :  { %989 = vmatpush3.bf16.msra.mxu1 %v1481_v10 }
  0x5e   :  { %957 = vmatpush3.bf16.msra.mxu0 %v1160_v9  ;;  %990 = vmatprep.subr.bf16.mxu1 %v1358_v0 }
  0x5f   :  { %958 = vmatprep.subr.bf16.mxu0 %v1162_v11 }
  0x61   :  { %991 = vmatpush3.bf16.msra.mxu1 %v1486_v13 }
  0x62   :  { %959 = vmatpush3.bf16.msra.mxu0 %v1162_v11  ;;  %992 = vmatprep.subr.bf16.mxu1 %v1358_v0 }
  0x63   :  { %960 = vmatprep.subr.bf16.mxu0 %v1164_v14 }
  0x65   :  { %993 = vmatpush3.bf16.msra.mxu1 %v1490_v15 }
  0x66   :  { %961 = vmatpush3.bf16.msra.mxu0 %v1164_v14  ;;  %994 = vmatprep.subr.bf16.mxu1 %v1358_v0 }
  0x67   :  { %962 = vmatprep.subr.bf16.mxu0 %v1166_v16 }
  0x69   :  { %995 = vmatpush3.bf16.msra.mxu1 %v1494_v17 }
  0x6a   :  { %963 = vmatpush3.bf16.msra.mxu0 %v1166_v16  ;;  %1020 = vmatprep.subr.bf16.mxu1 %v1358_v0 }
  0x6b   :  { %1000 = vmatprep.subr.bf16.mxu0 %v1358_v0 }
  0x6c   :  { %997 = vmatmul.mubr.bf16.vlgmr.msra.gmra.mrb[0].mxu1 %v354_v21 }
  0x6d   :  { %965 = vmatmul.mubr.bf16.vlgmr.msra.gmra.mrb[0].mxu0 %v1169_v20  ;;  %1021 = vmatpush3.bf16.msra.mxu1 %v1467_v2 }
  0x6e   :  { %1001 = vmatpush3.bf16.msra.mxu0 %v1467_v2  ;;  %968 = vmatprep.mubr.bf16.mxu0 %v1170_v22 }
  0x6f   :  { %1002 = vmatprep.subr.bf16.mxu0 %v1358_v0  ;;  %1022 = vmatprep.subr.bf16.mxu1 %v1358_v0 }
  0x70   :  { %1036 = vmatprep.mubr.msk.bf16.mxu1 %vm1359_vm0, %v1358_v0 }
  0x71   :  { %1023 = vmatpush3.bf16.msra.mxu1 %v1470_v4 }
  0x72   :  { %1003 = vmatpush3.bf16.msra.mxu0 %v1470_v4  ;;  %1024 = vmatprep.subr.bf16.mxu1 %v1358_v0 }
  0x73   :  { %1004 = vmatprep.subr.bf16.mxu0 %v1358_v0 }
  0x75   :  { %969 = vmatmul.mubr.bf16.gmra.mrb[4].mxu0 %v1171_v23  ;;  %1025 = vmatpush3.bf16.msra.mxu1 %v1474_v6 }
  0x76   :  { %1005 = vmatpush3.bf16.msra.mxu0 %v1474_v6  ;;  %1026 = vmatprep.subr.bf16.mxu1 %v1358_v0 }
  0x77   :  { %1006 = vmatprep.subr.bf16.mxu0 %v1358_v0  ;;  %972 = vmatprep.mubr.bf16.mxu0 %v1172_v24 }
  0x79   :  { %1027 = vmatpush3.bf16.msra.mxu1 %v1478_v8 }
  0x7a   :  { %1007 = vmatpush3.bf16.msra.mxu0 %v1478_v8  ;;  %1028 = vmatprep.subr.bf16.mxu1 %v1358_v0 }
  0x7b   :  { %1008 = vmatprep.subr.bf16.mxu0 %v1358_v0 }
  0x7d   :  { %1029 = vmatpush3.bf16.msra.mxu1 %v1481_v10  ;;  %973 = vmatmul.mubr.bf16.gmra.mrb[8].mxu0 %v1173_v25 }
  0x7e   :  { %1009 = vmatpush3.bf16.msra.mxu0 %v1481_v10  ;;  %1030 = vmatprep.subr.bf16.mxu1 %v1358_v0 }
  0x7f   :  { %1010 = vmatprep.subr.bf16.mxu0 %v1358_v0  ;;  %976 = vmatprep.mubr.bf16.mxu0 %v1174_v26 }
  0x81   :  { %1031 = vmatpush3.bf16.msra.mxu1 %v1486_v13 }
  0x82   :  { %1011 = vmatpush3.bf16.msra.mxu0 %v1486_v13  ;;  %1032 = vmatprep.subr.bf16.mxu1 %v1358_v0 }
  0x83   :  { %1012 = vmatprep.subr.bf16.mxu0 %v1358_v0 }
  0x85   :  { %1033 = vmatpush3.bf16.msra.mxu1 %v1490_v15  ;;  %977 = vmatmul.mubr.bf16.gmra.mrb[12].mxu0 %v1175_v27 }
  0x86   :  { %1013 = vmatpush3.bf16.msra.mxu0 %v1490_v15  ;;  %1034 = vmatprep.subr.bf16.mxu1 %v1358_v0 }
  0x87   :  { %1014 = vmatprep.subr.bf16.mxu0 %v1358_v0  ;;  %1016 = vmatprep.mubr.msk.bf16.mxu0 %vm1359_vm0, %v1358_v0 }
  0x89   :  { %1035 = vmatpush3.bf16.msra.mxu1 %v1494_v17 }
  0x8a   :  { %1015 = vmatpush3.bf16.msra.mxu0 %v1494_v17  ;;  %1060 = vmatprep.subr.bf16.mxu1 %v1358_v0 }
  0x8b   :  { %1040 = vmatprep.subr.bf16.mxu0 %v1358_v0 }
 0x13f   :  { %v437_v30 = vpop.f32.mrb[0].mxu1 }
 0x140   :  { %v966_v29 = vpop.f32.mrb[0].mxu0  ;;  %v998_v32 = vpop.f32.mrb[1].mxu1 }
 0x141   :  { %v250_v31 = vpop.f32.mrb[1].mxu0  ;;  %v440_v35 = vpop.f32.mrb[2].mxu1  ;;  %v322_v56 = vadd.f32 %v966_v29, %v1539_v28 }
 0x142   :  { %v320_v33 = vadd.f32 %v1539_v28, %v250_v31  ;;  %v967_v34 = vpop.f32.mrb[2].mxu0  ;;  %v999_v37 = vpop.f32.mrb[3].mxu1 }
 0x143   :  { %v253_v36 = vpop.f32.mrb[3].mxu0  ;;  %v323_v58 = vadd.f32 %v967_v34, %v1539_v28 }
 0x144   :  { %v444_v38 = vadd.f32 %v437_v30, %v320_v33  ;;  %v321_v39 = vadd.f32 %v1539_v28, %v253_v36 }
 0x146   :  { %1176 = vtanh.f32 %v444_v38  ;;  %v445_v40 = vadd.f32 %v440_v35, %v321_v39 }
 0x148   :  { %1178 = vtanh.f32 %v445_v40  ;;  %v1543_v41 = vpop.f32.mrb[4].mxu0 }
 0x149   :  { %v1545_v42 = vpop.f32.mrb[5].mxu0  ;;  %v326_v23 = vadd.f32 %v1543_v41, %v1539_v28 }
 0x14a   :  { %v1547_v43 = vpop.f32.mrb[6].mxu0  ;;  %v324_v7 = vadd.f32 %v1539_v28, %v1545_v42 }
 0x14b   :  { %v1549_v44 = vpop.f32.mrb[7].mxu0  ;;  %v327_v25 = vadd.f32 %v1547_v43, %v1539_v28 }
 0x14c   :  { %v325_v11 = vadd.f32 %v1539_v28, %v1549_v44 }
 0x150   :  { %v1177_v45 = vpop.eup %1176  ;;  %v1569_v48 = vpop.f32.mrb[8].mxu0 }
 0x151   :  { %448 = vst [vmem:[#allocation11] sm:$0xff] %v1177_v45  ;;  %v1571_v49 = vpop.f32.mrb[9].mxu0 }
 0x152   :  { %v1179_v46 = vpop.eup %1178  ;;  %v1573_v50 = vpop.f32.mrb[10].mxu0  ;;  %v328_v35 = vadd.f32 %v1539_v28, %v1571_v49 }
 0x153   :  { %449 = vst [vmem:[#allocation11 + $0x8] sm:$0xff] %v1179_v46  ;;  %v450_v47 = vpack.c.bf16 %v1179_v46, %v1177_v45  ;;  %v1575_v51 = vpop.f32.mrb[11].mxu0 }
 0x154   :  { %v329_v37 = vadd.f32 %v1539_v28, %v1575_v51 }
 0x155   :  { %1017 = vmatmul.mubr.bf16.vlgmr.msra.gmra.mrb[16].mxu0 %v450_v47 }
 0x156   :  { %1041 = vmatpush3.bf16.msra.mxu0 %v1467_v2  ;;  %1056 = vmatprep.mubr.msk.bf16.mxu0 %vm1359_vm0, %v1358_v0 }
 0x157   :  { %1042 = vmatprep.subr.bf16.mxu0 %v1358_v0 }
 0x158   :  { %v1577_v52 = vpop.f32.mrb[12].mxu0 }
 0x159   :  { %v1579_v53 = vpop.f32.mrb[13].mxu0 }
 0x15a   :  { %1043 = vmatpush3.bf16.msra.mxu0 %v1470_v4  ;;  %v1581_v54 = vpop.f32.mrb[14].mxu0 }
 0x15b   :  { %1044 = vmatprep.subr.bf16.mxu0 %v1358_v0  ;;  %v1583_v55 = vpop.f32.mrb[15].mxu0 }
 0x15e   :  { %1045 = vmatpush3.bf16.msra.mxu0 %v1474_v6 }
 0x15f   :  { %1046 = vmatprep.subr.bf16.mxu0 %v1358_v0 }
 0x162   :  { %1047 = vmatpush3.bf16.msra.mxu0 %v1478_v8 }
 0x163   :  { %1048 = vmatprep.subr.bf16.mxu0 %v1358_v0 }
 0x166   :  { %1049 = vmatpush3.bf16.msra.mxu0 %v1481_v10 }
 0x167   :  { %1050 = vmatprep.subr.bf16.mxu0 %v1358_v0 }
 0x16a   :  { %1051 = vmatpush3.bf16.msra.mxu0 %v1486_v13 }
 0x16b   :  { %1052 = vmatprep.subr.bf16.mxu0 %v1358_v0 }
 0x16e   :  { %1053 = vmatpush3.bf16.msra.mxu0 %v1490_v15 }
 0x16f   :  { %1054 = vmatprep.subr.bf16.mxu0 %v1358_v0 }
 0x172   :  { %1055 = vmatpush3.bf16.msra.mxu0 %v1494_v17 }
 0x173   :  { %1080 = vmatprep.subr.bf16.mxu0 %v1358_v0 }
 0x228   :  { %v485_v57 = vpop.f32.mrb[16].mxu0 }
 0x229   :  { %v492_v59 = vadd.f32 %v485_v57, %v322_v56  ;;  %v1018_v60 = vpop.f32.mrb[17].mxu0 }
 0x22a   :  { %v488_v61 = vpop.f32.mrb[18].mxu0 }
 0x22b   :  { %1180 = vtanh.f32 %v492_v59  ;;  %v493_v62 = vadd.f32 %v488_v61, %v323_v58  ;;  %v1019_v63 = vpop.f32.mrb[19].mxu0 }
 0x22d   :  { %1182 = vtanh.f32 %v493_v62 }
 0x235   :  { %v1181_v1 = vpop.eup %1180 }
 0x236   :  { %497 = vst [vmem:[#allocation11 + $0x10] sm:$0xff] %v1181_v1 }
 0x237   :  { %v1183_v3 = vpop.eup %1182 }
 0x238   :  { %498 = vst [vmem:[#allocation11 + $0x18] sm:$0xff] %v1183_v3  ;;  %v499_v5 = vpack.c.bf16 %v1183_v3, %v1181_v1 }
 0x23a   :  { %1037 = vmatmul.mubr.bf16.vlgmr.msra.gmra.mrb[4].mxu1 %v499_v5 }
 0x23b   :  { %1061 = vmatpush3.bf16.msra.mxu1 %v1467_v2  ;;  %1076 = vmatprep.mubr.msk.bf16.mxu1 %vm1359_vm0, %v1358_v0 }
 0x23c   :  { %1062 = vmatprep.subr.bf16.mxu1 %v1358_v0 }
 0x23f   :  { %1063 = vmatpush3.bf16.msra.mxu1 %v1470_v4 }
 0x240   :  { %1064 = vmatprep.subr.bf16.mxu1 %v1358_v0 }
 0x243   :  { %1065 = vmatpush3.bf16.msra.mxu1 %v1474_v6 }
 0x244   :  { %1066 = vmatprep.subr.bf16.mxu1 %v1358_v0 }
 0x247   :  { %1067 = vmatpush3.bf16.msra.mxu1 %v1478_v8 }
 0x248   :  { %1068 = vmatprep.subr.bf16.mxu1 %v1358_v0 }
 0x24b   :  { %1069 = vmatpush3.bf16.msra.mxu1 %v1481_v10 }
 0x24c   :  { %1070 = vmatprep.subr.bf16.mxu1 %v1358_v0 }
 0x24f   :  { %1071 = vmatpush3.bf16.msra.mxu1 %v1486_v13 }
 0x250   :  { %1072 = vmatprep.subr.bf16.mxu1 %v1358_v0 }
 0x253   :  { %1073 = vmatpush3.bf16.msra.mxu1 %v1490_v15 }
 0x254   :  { %1074 = vmatprep.subr.bf16.mxu1 %v1358_v0 }
 0x257   :  { %1075 = vmatpush3.bf16.msra.mxu1 %v1494_v17 }
 0x258   :  { %1100 = vmatprep.subr.bf16.mxu1 %v1358_v0 }
 0x30d   :  { %v534_v9 = vpop.f32.mrb[4].mxu1 }
 0x30e   :  { %v541_v12 = vadd.f32 %v534_v9, %v324_v7  ;;  %v1038_v14 = vpop.f32.mrb[5].mxu1 }
 0x30f   :  { %v537_v16 = vpop.f32.mrb[6].mxu1 }
 0x310   :  { %1184 = vtanh.f32 %v541_v12  ;;  %v542_v18 = vadd.f32 %v537_v16, %v325_v11  ;;  %v1039_v19 = vpop.f32.mrb[7].mxu1 }
 0x312   :  { %1186 = vtanh.f32 %v542_v18 }
 0x31a   :  { %v1185_v20 = vpop.eup %1184 }
 0x31b   :  { %546 = vst [vmem:[#allocation11 + $0x20] sm:$0xff] %v1185_v20 }
 0x31c   :  { %v1187_v21 = vpop.eup %1186 }
 0x31d   :  { %547 = vst [vmem:[#allocation11 + $0x28] sm:$0xff] %v1187_v21  ;;  %v548_v22 = vpack.c.bf16 %v1187_v21, %v1185_v20 }
 0x31f   :  { %1057 = vmatmul.mubr.bf16.vlgmr.msra.gmra.mrb[20].mxu0 %v548_v22 }
 0x320   :  { %1081 = vmatpush3.bf16.msra.mxu0 %v1467_v2  ;;  %1096 = vmatprep.mubr.msk.bf16.mxu0 %vm1359_vm0, %v1358_v0 }
 0x321   :  { %1082 = vmatprep.subr.bf16.mxu0 %v1358_v0 }
 0x324   :  { %1083 = vmatpush3.bf16.msra.mxu0 %v1470_v4 }
 0x325   :  { %1084 = vmatprep.subr.bf16.mxu0 %v1358_v0 }
 0x328   :  { %1085 = vmatpush3.bf16.msra.mxu0 %v1474_v6 }
 0x329   :  { %1086 = vmatprep.subr.bf16.mxu0 %v1358_v0 }
 0x32c   :  { %1087 = vmatpush3.bf16.msra.mxu0 %v1478_v8 }
 0x32d   :  { %1088 = vmatprep.subr.bf16.mxu0 %v1358_v0 }
 0x330   :  { %1089 = vmatpush3.bf16.msra.mxu0 %v1481_v10 }
 0x331   :  { %1090 = vmatprep.subr.bf16.mxu0 %v1358_v0 }
 0x334   :  { %1091 = vmatpush3.bf16.msra.mxu0 %v1486_v13 }
 0x335   :  { %1092 = vmatprep.subr.bf16.mxu0 %v1358_v0 }
 0x338   :  { %1093 = vmatpush3.bf16.msra.mxu0 %v1490_v15 }
 0x339   :  { %1094 = vmatprep.subr.bf16.mxu0 %v1358_v0 }
 0x33c   :  { %1095 = vmatpush3.bf16.msra.mxu0 %v1494_v17 }
 0x33d   :  { %1120 = vmatprep.subr.bf16.mxu0 %v1358_v0 }
 0x3f2   :  { %v583_v24 = vpop.f32.mrb[20].mxu0 }
 0x3f3   :  { %v590_v26 = vadd.f32 %v583_v24, %v326_v23  ;;  %v1058_v27 = vpop.f32.mrb[21].mxu0 }
 0x3f4   :  { %v586_v29 = vpop.f32.mrb[22].mxu0 }
 0x3f5   :  { %1188 = vtanh.f32 %v590_v26  ;;  %v591_v30 = vadd.f32 %v586_v29, %v327_v25  ;;  %v1059_v31 = vpop.f32.mrb[23].mxu0 }
 0x3f7   :  { %1190 = vtanh.f32 %v591_v30 }
 0x3ff   :  { %v1189_v32 = vpop.eup %1188 }
 0x400   :  { %595 = vst [vmem:[#allocation11 + $0x30] sm:$0xff] %v1189_v32 }
 0x401   :  { %v1191_v33 = vpop.eup %1190 }
 0x402   :  { %596 = vst [vmem:[#allocation11 + $0x38] sm:$0xff] %v1191_v33  ;;  %v597_v34 = vpack.c.bf16 %v1191_v33, %v1189_v32 }
 0x404   :  { %1077 = vmatmul.mubr.bf16.vlgmr.msra.gmra.mrb[8].mxu1 %v597_v34 }
 0x405   :  { %1101 = vmatpush3.bf16.msra.mxu1 %v1467_v2  ;;  %1116 = vmatprep.mubr.msk.bf16.mxu1 %vm1359_vm0, %v1358_v0 }
 0x406   :  { %1102 = vmatprep.subr.bf16.mxu1 %v1358_v0 }
 0x409   :  { %1103 = vmatpush3.bf16.msra.mxu1 %v1470_v4 }
 0x40a   :  { %1104 = vmatprep.subr.bf16.mxu1 %v1358_v0 }
 0x40d   :  { %1105 = vmatpush3.bf16.msra.mxu1 %v1474_v6 }
 0x40e   :  { %1106 = vmatprep.subr.bf16.mxu1 %v1358_v0 }
 0x411   :  { %1107 = vmatpush3.bf16.msra.mxu1 %v1478_v8 }
 0x412   :  { %1108 = vmatprep.subr.bf16.mxu1 %v1358_v0 }
 0x415   :  { %1109 = vmatpush3.bf16.msra.mxu1 %v1481_v10 }
 0x416   :  { %1110 = vmatprep.subr.bf16.mxu1 %v1358_v0 }
 0x419   :  { %1111 = vmatpush3.bf16.msra.mxu1 %v1486_v13 }
 0x41a   :  { %1112 = vmatprep.subr.bf16.mxu1 %v1358_v0 }
 0x41d   :  { %1113 = vmatpush3.bf16.msra.mxu1 %v1490_v15 }
 0x41e   :  { %1114 = vmatprep.subr.bf16.mxu1 %v1358_v0 }
 0x421   :  { %1115 = vmatpush3.bf16.msra.mxu1 %v1494_v17 }
 0x4d7   :  { %v632_v36 = vpop.f32.mrb[8].mxu1 }
 0x4d8   :  { %v639_v38 = vadd.f32 %v632_v36, %v328_v35  ;;  %v1078_v39 = vpop.f32.mrb[9].mxu1 }
 0x4d9   :  { %v635_v40 = vpop.f32.mrb[10].mxu1 }
 0x4da   :  { %1192 = vtanh.f32 %v639_v38  ;;  %v640_v41 = vadd.f32 %v635_v40, %v329_v37  ;;  %v1079_v42 = vpop.f32.mrb[11].mxu1 }
 0x4dc   :  { %1194 = vtanh.f32 %v640_v41 }
 0x4e4   :  { %v1193_v43 = vpop.eup %1192 }
 0x4e5   :  { %644 = vst [vmem:[#allocation11 + $0x40] sm:$0xff] %v1193_v43 }
 0x4e6   :  { %v1195_v44 = vpop.eup %1194 }
 0x4e7   :  { %645 = vst [vmem:[#allocation11 + $0x48] sm:$0xff] %v1195_v44  ;;  %v646_v45 = vpack.c.bf16 %v1195_v44, %v1193_v43 }
 0x4e9   :  { %1097 = vmatmul.mubr.bf16.vlgmr.msra.gmra.mrb[24].mxu0 %v646_v45 }
 0x4ea   :  { %1121 = vmatpush3.bf16.msra.mxu0 %v1467_v2  ;;  %1136 = vmatprep.mubr.msk.bf16.mxu0 %vm1359_vm0, %v1358_v0  ;;  %v330_v2 = vadd.f32 %v1569_v48, %v1539_v28 }
 0x4eb   :  { %1122 = vmatprep.subr.bf16.mxu0 %v1358_v0 }
 0x4ee   :  { %1123 = vmatpush3.bf16.msra.mxu0 %v1470_v4 }
 0x4ef   :  { %1124 = vmatprep.subr.bf16.mxu0 %v1358_v0 }
 0x4f2   :  { %1125 = vmatpush3.bf16.msra.mxu0 %v1474_v6  ;;  %v331_v6 = vadd.f32 %v1573_v50, %v1539_v28  ;;  %v333_v50 = vadd.f32 %v1539_v28, %v1583_v55  ;;  %v335_v55 = vadd.f32 %v1581_v54, %v1539_v28 }
 0x4f3   :  { %1126 = vmatprep.subr.bf16.mxu0 %v1358_v0 }
 0x4f6   :  { %1127 = vmatpush3.bf16.msra.mxu0 %v1478_v8 }
 0x4f7   :  { %1128 = vmatprep.subr.bf16.mxu0 %v1358_v0 }
 0x4fa   :  { %1129 = vmatpush3.bf16.msra.mxu0 %v1481_v10 }
 0x4fb   :  { %1130 = vmatprep.subr.bf16.mxu0 %v1358_v0 }
 0x4fe   :  { %1131 = vmatpush3.bf16.msra.mxu0 %v1486_v13 }
 0x4ff   :  { %1132 = vmatprep.subr.bf16.mxu0 %v1358_v0 }
 0x502   :  { %1133 = vmatpush3.bf16.msra.mxu0 %v1490_v15 }
 0x503   :  { %1134 = vmatprep.subr.bf16.mxu0 %v1358_v0 }
 0x506   :  { %1135 = vmatpush3.bf16.msra.mxu0 %v1494_v17  ;;  %v332_v17 = vadd.f32 %v1539_v28, %v1579_v53  ;;  %v334_v53 = vadd.f32 %v1577_v52, %v1539_v28 }
 0x5bc   :  { %v681_v4 = vpop.f32.mrb[24].mxu0 }
 0x5bd   :  { %v688_v8 = vadd.f32 %v681_v4, %v330_v2  ;;  %v1098_v10 = vpop.f32.mrb[25].mxu0 }
 0x5be   :  { %v684_v46 = vpop.f32.mrb[26].mxu0 }
 0x5bf   :  { %1196 = vtanh.f32 %v688_v8  ;;  %v689_v13 = vadd.f32 %v684_v46, %v331_v6  ;;  %v1099_v47 = vpop.f32.mrb[27].mxu0 }
 0x5c1   :  { %1198 = vtanh.f32 %v689_v13 }
 0x5c9   :  { %v1197_v49 = vpop.eup %1196 }
 0x5ca   :  { %693 = vst [vmem:[#allocation11 + $0x50] sm:$0xff] %v1197_v49 }
 0x5cb   :  { %v1199_v15 = vpop.eup %1198 }
 0x5cc   :  { %694 = vst [vmem:[#allocation11 + $0x58] sm:$0xff] %v1199_v15  ;;  %v695_v0 = vpack.c.bf16 %v1199_v15, %v1197_v49 }
 0x5ce   :  { %1117 = vmatmul.mubr.bf16.vlgmr.msra.gmra.mrb[12].mxu1 %v695_v0 }
 0x6a1   :  { %v730_v48 = vpop.f32.mrb[12].mxu1 }
 0x6a2   :  { %v737_v51 = vadd.f32 %v730_v48, %v332_v17  ;;  %v1118_v56 = vpop.f32.mrb[13].mxu1 }
 0x6a3   :  { %v733_v57 = vpop.f32.mrb[14].mxu1 }
 0x6a4   :  { %1200 = vtanh.f32 %v737_v51  ;;  %v738_v58 = vadd.f32 %v733_v57, %v333_v50  ;;  %v1119_v59 = vpop.f32.mrb[15].mxu1 }
 0x6a6   :  { %1202 = vtanh.f32 %v738_v58 }
 0x6ae   :  { %v1201_v60 = vpop.eup %1200 }
 0x6af   :  { %742 = vst [vmem:[#allocation11 + $0x60] sm:$0xff] %v1201_v60 }
 0x6b0   :  { %v1203_v61 = vpop.eup %1202 }
 0x6b1   :  { %743 = vst [vmem:[#allocation11 + $0x68] sm:$0xff] %v1203_v61  ;;  %v744_v62 = vpack.c.bf16 %v1203_v61, %v1201_v60 }
 0x6b3   :  { %1137 = vmatmul.mubr.bf16.vlgmr.msra.gmra.mrb[28].mxu0 %v744_v62 }
 0x786   :  { %v779_v63 = vpop.f32.mrb[28].mxu0 }
 0x787   :  { %v786_v1 = vadd.f32 %v779_v63, %v334_v53  ;;  %v1138_v3 = vpop.f32.mrb[29].mxu0 }
 0x788   :  { %v782_v5 = vpop.f32.mrb[30].mxu0 }
 0x789   :  { %1204 = vtanh.f32 %v786_v1  ;;  %v787_v7 = vadd.f32 %v782_v5, %v335_v55  ;;  %v1139_v9 = vpop.f32.mrb[31].mxu0 }
 0x78b   :  { %1206 = vtanh.f32 %v787_v7 }
 0x793   :  { %v1205_v11 = vpop.eup %1204 }
 0x794   :  { %791 = vst [vmem:[#allocation11 + $0x70] sm:$0xff] %v1205_v11  ;;  %798 = vst [vmem:[#allocation12] sm:$0xff] %v1205_v11 }
 0x795   :  { %v1207_v52 = vpop.eup %1206 }
 0x796   :  { %792 = vst [vmem:[#allocation11 + $0x78] sm:$0xff] %v1207_v52  ;;  %799 = vst [vmem:[#allocation12 + $0x8] sm:$0xff] %v1207_v52 }
 0x797   :  { %1307 = shalt.err (!%p1304_p8)
}
 0x798   :  { %s1308_s30 = scalar_lea.hbm %s1723_s5, 2048 }
 0x799   :  { %p1309_p9 = scmp.ne.s32.totalorder %s1723_s5, %s1308_s30  ;;  %p1312_p10 = scmp.lt.u32.totalorder %s1308_s30, %s1723_s5 }
 0x79b   :  { %p1314_p11 = pnand %p1312_p10, %p1309_p9 }
 0x79d   :  { %1317 = shalt.err (!%p1314_p11)
}
 0x79e   :  { %811 = dma.vmem_to_hbm [thread:$0]  %s806_s21, 2048, %s1723_s5, [#allocation5], %s1351_s7, %s1351_s7, %s1352_s8  }
 0x79f   :  { %s1318_s14 = scalar_lea.vmem %s1681_s26, 256  ;;  %p1323_p13 = scmp.lt.s32.totalorder %s1681_s26, %s1681_s26 }
 0x7a0   :  { %p1319_p12 = scmp.ne.s32.totalorder %s1681_s26, %s1318_s14  ;;  %p1324_p0 = scmp.lt.s32.totalorder %s1318_s14, %s1318_s14 }
 0x7a2   :  { %p1325_p1 = por %p1324_p0, %p1323_p13 }
 0x7a4   :  { %p1326_p2 = pnand %p1325_p1, %p1319_p12 }
 0x7a6   :  { %1329 = shalt.err (!%p1326_p2)
}
 0x7a7   :  { %s1330_s17 = scalar_lea.hbm %s1724_s6, 256 }
 0x7a8   :  { %p1331_p3 = scmp.ne.s32.totalorder %s1724_s6, %s1330_s17  ;;  %p1334_p4 = scmp.lt.u32.totalorder %s1330_s17, %s1724_s6 }
 0x7aa   :  { %p1336_p5 = pnand %p1334_p4, %p1331_p3 }
 0x7ac   :  { %1339 = shalt.err (!%p1336_p5)
}
 0x7ad   :  { %823 = dma.vmem_to_hbm [thread:$0]  %s1681_s26, 256, %s1724_s6, [#allocation13], %s1351_s7, %s1351_s7, %s1352_s8  }
 0x7ae   :  { %1346 = dma.done.wait [#allocation5], 2048  }
 0x7af   :  { %1347 = vsyncadd [#allocation5], 4294965248 }
 0x7b0   :  { %1348 = dma.done.wait [#allocation13], 256  }
 0x7b1   :  { %1349 = vsyncadd [#allocation13], 4294967040 }
 0x7b2   :  { %830 = vsyncpa [#allocation4], 1 }
 0x7b3   :  { %831 = vsyncpa [#allocation7], 1 }
 0x7b4   :  { %832 = vsyncpa [#allocation10], 1 }
 0x7b5   :  { %833 = vsyncpa [#allocation5], 1 }
 0x7b6   :  { %834 = vsyncpa [#allocation13], 1 }

</bundles_post_ra>
